<compile_context>
chip_gen: v5e
topology: v5e:2x2
jax: 0.10.0
libtpu: 0.0.40
codegen_flags: <defaults>
</compile_context>

<pallas_src>
import jax
import jax.numpy as jnp
from jax.experimental import pallas as pl
from jax.experimental.pallas import tpu as pltpu


# ------------------------------------------------------------ fused kernel
def _se_fused_kernel(x_ref, w1t_ref, w2t_ref, o_ref):
    # x_ref/o_ref: (bt, C, H, W); w1t: (C, hidden) with 1/(H*W) folded in;
    # w2t: (hidden, C).
    x = x_ref[...]
    # Squeeze: pooled sum with f32 accumulation; two single-axis reduces so
    # no full-block f32 upcast is materialized (mean's 1/HW lives in w1t).
    y = jnp.sum(jnp.sum(x, axis=-1, dtype=jnp.float32), axis=-1)        # (bt, C)
    # Excitation: Linear -> ReLU -> Linear -> Sigmoid (tiny MXU/EUP work).
    h = jnp.maximum(
        jnp.dot(y, w1t_ref[...], preferred_element_type=jnp.float32), 0.0)
    s = jax.nn.sigmoid(
        jnp.dot(h, w2t_ref[...], preferred_element_type=jnp.float32))   # (bt, C)
    # Scale: per-(batch, channel) gate broadcast over (H, W), in x.dtype.
    o_ref[...] = x * s.astype(x.dtype)[:, :, None, None]


# -------------------------------------------------- split (fallback) kernels
def _se_pool_kernel(x_ref, y_ref):
    # x_ref: (1, c_t, H, W); y_ref: (1, c_t, 1, 1) f32 pooled sum. Each block
    # holds the full (H, W), so no cross-step accumulation is needed.
    s0 = jnp.sum(x_ref[...], axis=-1, keepdims=True, dtype=jnp.float32)  # (1,c_t,H,1)
    y_ref[...] = jnp.sum(s0, axis=-2, keepdims=True)                     # (1,c_t,1,1)


def _se_scale_kernel(x_ref, s_ref, o_ref):
    # x_ref/o_ref: (1, c_t, H, W); s_ref: (1, c_t, 1, 1) gate.
    x = x_ref[...]
    o_ref[...] = x * s_ref[...].astype(x.dtype)


# --------------------------------------------------------------- helpers
def _round_up(v, m):
    return (v + m - 1) // m * m


def _vmem_capacity_bytes():
    # Generation-aware VMEM size (128 MiB v5e/v6e, 64 MiB per core on v7x).
    try:
        cap = getattr(pltpu.get_tpu_info(), "vmem_capacity_bytes", None)
        if cap:
            return int(cap)
    except Exception:
        pass
    return 64 << 20  # conservative fallback (v7x per-core VMEM)


def _padded_block_bytes(shape, itemsize):
    # VMEM footprint of a block: minor two dims tile to (sublane, 128) with
    # sublane packing 8/16/32 for 4/2/1-byte dtypes.
    sub = max(8, 32 // max(1, itemsize))
    lead = 1
    for d in shape[:-2]:
        lead *= int(d)
    return lead * _round_up(int(shape[-2]), sub) * _round_up(int(shape[-1]), 128) * itemsize


def _vmem_limit(block_bytes_total, extra_bytes=0):
    # Double-buffered blocks + resident weights + slack. No big artificial
    # floor; clamp below physical VMEM so Mosaic keeps internal-scratch room.
    cap = _vmem_capacity_bytes()
    needed = 2 * block_bytes_total + extra_bytes + (4 << 20)
    return int(min(max(needed, 8 << 20), cap * 3 // 4))


def _pick_tile(total, max_tile, ensure_two_steps, exact):
    """Largest tile in [1, total] within max_tile; optionally capped so the
    tiled axis gets >= 2 grid steps; optionally forced to divide exactly."""
    t = max(1, min(total, max_tile))
    if ensure_two_steps and total >= 2:
        t = min(t, -(-total // 2))          # ceil(total/2) -> >= 2 steps
    if exact:
        while total % t:
            t -= 1
    return t


# --------------------------------------------------------------- wrappers
def _se_fused(x, w1t, w2t, block_bytes_limit, donate_x):
    B, C, H, W = x.shape
    hidden = w1t.shape[1]
    itemsize = x.dtype.itemsize
    per_image_vmem = _padded_block_bytes((1, C, H, W), itemsize)

    # Pack as many batch elements per grid step as the VMEM budget allows,
    # but keep >= 2 grid steps when B >= 2 so both v7x TensorCores get work.
    # With donate_x (in-place output) force bt to divide B exactly.
    bt = _pick_tile(B, block_bytes_limit // per_image_vmem,
                    ensure_two_steps=True, exact=donate_x)
    grid = pl.cdiv(B, bt)

    block_bytes = 2 * bt * per_image_vmem                  # input + output block
    # NOTE: weight specs keep default double-buffering (constant index_map so
    # no re-DMA per step); both buffers are accounted for in the VMEM budget.
    weight_bytes = 2 * (_padded_block_bytes(w1t.shape, 4)
                        + _padded_block_bytes(w2t.shape, 4))

    x_bytes = x.size * itemsize
    cost = pl.CostEstimate(
        flops=2 * x.size + 4 * B * C * hidden,
        transcendentals=B * C,
        bytes_accessed=2 * x_bytes + (w1t.size + w2t.size) * 4)

    return pl.pallas_call(
        _se_fused_kernel,
        out_shape=jax.ShapeDtypeStruct((B, C, H, W), x.dtype),
        grid_spec=pltpu.PrefetchScalarGridSpec(
            num_scalar_prefetch=0,
            grid=(grid,),
            in_specs=[
                pl.BlockSpec((bt, C, H, W), lambda g: (g, 0, 0, 0)),
                pl.BlockSpec((C, hidden), lambda g: (0, 0)),
                pl.BlockSpec((hidden, C), lambda g: (0, 0)),
            ],
            out_specs=pl.BlockSpec((bt, C, H, W), lambda g: (g, 0, 0, 0)),
        ),
        compiler_params=pltpu.CompilerParams(
            dimension_semantics=("parallel",),
            vmem_limit_bytes=_vmem_limit(block_bytes, weight_bytes),
        ),
        cost_estimate=cost,
        input_output_aliases=({0: 0} if donate_x else {}),
    )(x, w1t, w2t)


def _se_split(x, w1t, w2t, block_bytes_limit, donate_x):
    B, C, H, W = x.shape
    itemsize = x.dtype.itemsize
    per_channel_vmem = _padded_block_bytes((1, 1, H, W), itemsize)

    # Channel tiles: channels are independent in both passes, so cdiv tails are
    # safe without masking. For B == 1 keep >= 2 channel tiles so both v7x
    # TensorCores get work on the big HBM passes.
    c_t = _pick_tile(C, block_bytes_limit // per_channel_vmem,
                     ensure_two_steps=(B == 1), exact=donate_x)
    n_c = pl.cdiv(C, c_t)
    # TODO(synk): if a single channel's (H, W) exceeds the VMEM budget, add an
    # extra masked H-tiling partial-sum stage here.

    x_bytes = x.size * itemsize
    gate_bytes = B * C * 4
    pooled_block = _padded_block_bytes((1, c_t, 1, 1), 4)

    # Pass 1: pooled sums (B, C, 1, 1) in f32; each block reduces its full (H, W).
    pooled = pl.pallas_call(
        _se_pool_kernel,
        out_shape=jax.ShapeDtypeStruct((B, C, 1, 1), jnp.float32),
        grid_spec=pltpu.PrefetchScalarGridSpec(
            num_scalar_prefetch=0,
            grid=(B, n_c),
            in_specs=[pl.BlockSpec((1, c_t, H, W), lambda b, t: (b, t, 0, 0))],
            out_specs=pl.BlockSpec((1, c_t, 1, 1), lambda b, t: (b, t, 0, 0)),
        ),
        compiler_params=pltpu.CompilerParams(
            dimension_semantics=("parallel", "parallel"),
            vmem_limit_bytes=_vmem_limit(c_t * per_channel_vmem + pooled_block),
        ),
        cost_estimate=pl.CostEstimate(
            flops=x.size, transcendentals=0,
            bytes_accessed=x_bytes + gate_bytes),
    )(x)

    # Tiny whole-batch excitation in plain XLA ((B,C) matmuls; negligible).
    y = pooled.reshape(B, C)                                   # 1/HW folded into w1t
    gate = jax.nn.sigmoid(jnp.maximum(y @ w1t, 0.0) @ w2t)     # (B, C) f32
    gate = gate.reshape(B, C, 1, 1)

    # Pass 2: channelwise rescale tiled over (B, channel tiles).
    return pl.pallas_call(
        _se_scale_kernel,
        out_shape=jax.ShapeDtypeStruct((B, C, H, W), x.dtype),
        grid_spec=pltpu.PrefetchScalarGridSpec(
            num_scalar_prefetch=0,
            grid=(B, n_c),
            in_specs=[
                pl.BlockSpec((1, c_t, H, W), lambda b, t: (b, t, 0, 0)),
                pl.BlockSpec((1, c_t, 1, 1), lambda b, t: (b, t, 0, 0)),
            ],
            out_specs=pl.BlockSpec((1, c_t, H, W), lambda b, t: (b, t, 0, 0)),
        ),
        compiler_params=pltpu.CompilerParams(
            dimension_semantics=("parallel", "parallel"),
            vmem_limit_bytes=_vmem_limit(2 * c_t * per_channel_vmem + pooled_block),
        ),
        cost_estimate=pl.CostEstimate(
            flops=x.size, transcendentals=0,
            bytes_accessed=2 * x_bytes + gate_bytes),
        input_output_aliases=({0: 0} if donate_x else {}),
    )(x, gate)


def se_layer(x, w1, w2, *, block_bytes_limit=None, donate_x=False):
    """SELayer forward.

    x : (B, C, H, W)
    w1: (C//r, C)  first nn.Linear weight (PyTorch (out, in)), no bias
    w2: (C, C//r)  second nn.Linear weight, no bias
    donate_x: alias the output onto x's buffer; only set when the caller
      actually donates x (e.g. jit(..., donate_argnums)).
    """
    B, C, H, W = x.shape
    hidden = w1.shape[0]
    assert w1.shape == (hidden, C) and w2.shape == (C, hidden)

    if block_bytes_limit is None:
        # ~16 MiB input blocks on 128 MiB-VMEM parts (v5e/v6e), ~8 MiB on v7x.
        block_bytes_limit = max(_vmem_capacity_bytes() // 8, 2 << 20)

    # One-time weight prep: fold the 1/(H*W) of the mean into W1 and
    # pre-transpose so kernels need no per-step transposes or divides.
    w1t = (w1.astype(jnp.float32) * (1.0 / (H * W))).T      # (C, hidden)
    w2t = w2.astype(jnp.float32).T                          # (hidden, C)

    per_image_vmem = _padded_block_bytes((1, C, H, W), x.dtype.itemsize)
    if per_image_vmem <= block_bytes_limit:
        return _se_fused(x, w1t, w2t, block_bytes_limit, donate_x)
    return _se_split(x, w1t, w2t, block_bytes_limit, donate_x)


def se_layer_ref(x, w1, w2):
    # Pure-JAX reference mirroring the PyTorch module.
    y = jnp.mean(x.astype(jnp.float32), axis=(2, 3))            # (B, C)
    h = jnp.maximum(y @ w1.T, 0.0)                              # (B, C//r)
    s = jax.nn.sigmoid(h @ w2.T)                                # (B, C)
    return (x * s[:, :, None, None].astype(x.dtype)).astype(x.dtype)


if __name__ == "__main__":
    B, C, H, W = 2, 32, 16, 16
    reduction = 16
    hidden = C // reduction

    key = jax.random.PRNGKey(0)
    kx, k1, k2, kx2 = jax.random.split(key, 4)

    x = jax.random.normal(kx, (B, C, H, W), dtype=jnp.float32)
    w1 = jax.random.normal(k1, (hidden, C), dtype=jnp.float32) * (1.0 / jnp.sqrt(C))
    w2 = jax.random.normal(k2, (C, hidden), dtype=jnp.float32) * (1.0 / jnp.sqrt(hidden))

    ref = se_layer_ref(x, w1, w2)

    # Fused single-pass path (generation-aware default budget).
    out = jax.block_until_ready(se_layer(x, w1, w2))
    assert out.shape == x.shape and out.dtype == x.dtype
    assert jnp.allclose(out, ref, atol=1e-5, rtol=1e-5)

    # Force the channel-tiled pool+scale fallback used for large C*H*W.
    out_split = jax.block_until_ready(se_layer(x, w1, w2, block_bytes_limit=64 * 1024))
    assert jnp.allclose(out_split, ref, atol=1e-5, rtol=1e-5)

    # Odd batch + non-multiple-of-8/128 spatial size exercises cdiv tail blocks
    # (no wrapper padding anywhere).
    x2 = jax.random.normal(kx2, (3, C, 10, 10), dtype=jnp.float32)
    ref2 = se_layer_ref(x2, w1, w2)
    out2 = jax.block_until_ready(se_layer(x2, w1, w2))
    assert jnp.allclose(out2, ref2, atol=1e-5, rtol=1e-5)

    # Split path with a channel tile that does not divide C (tail channel block).
    out2_split = jax.block_until_ready(se_layer(x2, w1, w2, block_bytes_limit=40 * 1024))
    assert jnp.allclose(out2_split, ref2, atol=1e-5, rtol=1e-5)

    # Donated-input path: output aliases x's HBM buffer under jit donation.
    se_donating = jax.jit(lambda xx: se_layer(xx, w1, w2, donate_x=True),
                          donate_argnums=(0,))
    xd = x + 0.0
    out_d = jax.block_until_ready(se_donating(xd))
    assert jnp.allclose(out_d, ref, atol=1e-5, rtol=1e-5)

    print("KERNEL_OK")
</pallas_src>

<mosaic_0001>
module attributes {stable_mosaic.version = 11 : i64} {
  func.func @_se_fused_kernel(%arg0: i32, %arg1: memref<1x32x16x16xf32, #tpu.memory_space<vmem>>, %arg2: memref<32x2xf32, #tpu.memory_space<vmem>>, %arg3: memref<2x32xf32, #tpu.memory_space<vmem>>, %arg4: memref<1x32x16x16xf32, #tpu.memory_space<vmem>>) attributes {dimension_semantics = [#tpu.dimension_semantics<parallel>], iteration_bounds = array<i64: 2>, scalar_prefetch = 0 : i64, scratch_operands = 0 : i64, tpu.core_type = #tpu.core_type<tc>, window_params = [{transform_indices = @transform_0, window_bounds = array<i64: 1, 32, 16, 16>}, {pipeline_mode = #tpu.pipeline_mode<synchronous>, transform_indices = @transform_1, window_bounds = array<i64: 32, 2>}, {pipeline_mode = #tpu.pipeline_mode<synchronous>, transform_indices = @transform_2, window_bounds = array<i64: 2, 32>}, {transform_indices = @transform_3, window_bounds = array<i64: 1, 32, 16, 16>}]} {
    %c0 = arith.constant 0 : index
    %c0_0 = arith.constant 0 : index
    %c0_1 = arith.constant 0 : index
    %c0_2 = arith.constant 0 : index
    %0 = vector.load %arg1[%c0, %c0_0, %c0_1, %c0_2] : memref<1x32x16x16xf32, #tpu.memory_space<vmem>>, vector<1x32x16x16xf32>
    %cst = arith.constant dense<0.000000e+00> : vector<1x32x16xf32>
    %1 = vector.multi_reduction <add>, %0, %cst [3] : vector<1x32x16x16xf32> to vector<1x32x16xf32>
    %cst_3 = arith.constant dense<0.000000e+00> : vector<1x32xf32>
    %2 = vector.multi_reduction <add>, %1, %cst_3 [2] : vector<1x32x16xf32> to vector<1x32xf32>
    %c0_4 = arith.constant 0 : index
    %c0_5 = arith.constant 0 : index
    %3 = vector.load %arg2[%c0_4, %c0_5] : memref<32x2xf32, #tpu.memory_space<vmem>>, vector<32x2xf32>
    %cst_6 = arith.constant dense<0.000000e+00> : vector<1x2xf32>
    %4 = tpu.matmul %2, %3, %cst_6 {dimension_numbers = #tpu.dot_dimension_numbers<[1], [0], [0], [1], [0, 0, 1, 1], [], []>} : vector<1x32xf32>, vector<32x2xf32>, vector<1x2xf32> -> vector<1x2xf32>
    %cst_7 = arith.constant 0.000000e+00 : f32
    %5 = vector.broadcast %cst_7 : f32 to vector<1x2xf32>
    %6 = arith.maximumf %4, %5 : vector<1x2xf32>
    %c0_8 = arith.constant 0 : index
    %c0_9 = arith.constant 0 : index
    %7 = vector.load %arg3[%c0_8, %c0_9] : memref<2x32xf32, #tpu.memory_space<vmem>>, vector<2x32xf32>
    %cst_10 = arith.constant dense<0.000000e+00> : vector<1x32xf32>
    %8 = tpu.matmul %6, %7, %cst_10 {dimension_numbers = #tpu.dot_dimension_numbers<[1], [0], [0], [1], [0, 0, 1, 1], [], []>} : vector<1x2xf32>, vector<2x32xf32>, vector<1x32xf32> -> vector<1x32xf32>
    %9 = arith.negf %8 : vector<1x32xf32>
    %10 = math.exp %9 : vector<1x32xf32>
    %cst_11 = arith.constant 1.000000e+00 : f32
    %11 = vector.broadcast %cst_11 : f32 to vector<1x32xf32>
    %12 = arith.addf %11, %10 : vector<1x32xf32>
    %13 = arith.divf %11, %12 : vector<1x32xf32>
    %14 = vector.shape_cast %13 : vector<1x32xf32> to vector<1x32x1x1xf32>
    %15 = vector.broadcast %14 : vector<1x32x1x1xf32> to vector<1x32x16x16xf32>
    %16 = arith.mulf %0, %15 : vector<1x32x16x16xf32>
    %c0_12 = arith.constant 0 : index
    %c0_13 = arith.constant 0 : index
    %c0_14 = arith.constant 0 : index
    %c0_15 = arith.constant 0 : index
    %17 = vector.load %arg4[%c0_12, %c0_13, %c0_14, %c0_15] : memref<1x32x16x16xf32, #tpu.memory_space<vmem>>, vector<1x32x16x16xf32>
    tpu.vector_store %arg4[%c0_12, %c0_13, %c0_14, %c0_15], %16 {strides = array<i32>} : memref<1x32x16x16xf32, #tpu.memory_space<vmem>>, vector<1x32x16x16xf32>,
    return
  }
  func.func @transform_0(%arg0: i32) -> (i32, i32, i32, i32) {
    %c0_i32 = arith.constant 0 : i32
    %c0_i32_0 = arith.constant 0 : i32
    %c0_i32_1 = arith.constant 0 : i32
    %c0_i32_2 = arith.constant 0 : i32
    return %arg0, %c0_i32, %c0_i32_0, %c0_i32_1 : i32, i32, i32, i32
  }
  func.func @transform_1(%arg0: i32) -> (i32, i32) {
    %c0_i32 = arith.constant 0 : i32
    %c0_i32_0 = arith.constant 0 : i32
    %c0_i32_1 = arith.constant 0 : i32
    return %c0_i32, %c0_i32_0 : i32, i32
  }
  func.func @transform_2(%arg0: i32) -> (i32, i32) {
    %c0_i32 = arith.constant 0 : i32
    %c0_i32_0 = arith.constant 0 : i32
    %c0_i32_1 = arith.constant 0 : i32
    return %c0_i32, %c0_i32_0 : i32, i32
  }
  func.func @transform_3(%arg0: i32) -> (i32, i32, i32, i32) {
    %c0_i32 = arith.constant 0 : i32
    %c0_i32_0 = arith.constant 0 : i32
    %c0_i32_1 = arith.constant 0 : i32
    %c0_i32_2 = arith.constant 0 : i32
    return %arg0, %c0_i32, %c0_i32_0, %c0_i32_1 : i32, i32, i32, i32
  }
}

</mosaic_0001>

<bundles_post_ra>
// kernel: tpu_custom_call.1
= control target key start
LH: loop header
LB: loop body
LE: loop exit
PB: predicated region body
PF: predicated region fallthrough
CT: control target
= control target key end

     0   :  { %s1048_s12 = smov 0   ;;  %s1741_s0 = inlined_call_operand.vmem [shape: f32[2,32,16,16], index: 0, kind: input, shape index: {}]   ;;  %s1742_s1 = inlined_call_operand.vmem [shape: f32[32,2], index: 1, kind: input, shape index: {}]   ;;  %s1743_s2 = inlined_call_operand.vmem [shape: f32[2,32], index: 2, kind: input, shape index: {}]   ;;  %s1744_s3 = inlined_call_operand.vmem [shape: f32[2,32,16,16], index: 3, kind: output, shape index: {}]  }
   0x1 LB: > { %s974_s13 = sadd.s32 4294967295, %s1026_s12   ;;  %p978_p0 = scmp.ge.s32.totalorder %s1026_s12, 1  ;;  %s1026_s12 = sphi %s1048_s12, %s13_s12  }
   0x2   : > { %p137_p1 = scmp.lt.s32.totalorder %s1026_s12, 3 }
   0x4   : > { %p138_p2 = pnand %p978_p0, %p137_p1 }
   0x6   : > { %141 = sbr.rel (%p138_p2) target bundleno = 871 (0x367), region = 32 }
   0xb   : > { %p161_p3 = scmp.lt.s32.totalorder %s974_s13, 1  ;;  %vm235_vm0 = vcmask 130048   ;;  %vm497_vm1 = vcmask 130112   ;;  %vm592_vm2 = vcmask 1041409   ;;  %vm594_vm3 = vcmask 1042434  }
   0xc   : > { %vm596_vm4 = vcmask 1043459   ;;  %vm598_vm5 = vcmask 1044484   ;;  %vm600_vm6 = vcmask 1045509   ;;  %vm602_vm7 = vcmask 1046534  }
   0xd   : > { %s1817_s13 = smov (!%p161_p3, %s974_s13), 1  ;;  %vm604_vm8 = vcmask 1047559   ;;  %vm656_vm9 = vcmask 195712   ;;  %vm660_vm10 = vcmask 261312   ;;  %vm662_vm11 = vcmask 261120  }
   0xe   : > { %s989_s14 = sshll.u32 %s1817_s13, 9  ;;  %vm691_vm12 = vcmask 1041408   ;;  %vm687_vm13 = vcmask 15360  }
   0xf   : > { %s1064_s17 = scalar_lea.vmem %s1741_s0, %s989_s14  ;;  %s1534_s30 = scalar_lea.vmem %s1744_s3, %s989_s14 }
  0x10   : > { %v187_v0 = vld [vmem:[%s1064_s17 + $0x80] sm:$0xff]  ;;  %v1068_v1 = vld [vmem:[%s1064_s17 + $0x10] sm:$0xff]  ;;  %v188_v6 = vld [vmem:[%s1064_s17 + $0x88] sm:$0xff] }
  0x11   : > { %v1071_v2 = vld [vmem:[%s1064_s17] sm:$0xff]  ;;  %v284_v3 = vsel %vm235_vm0, %v187_v0, 0.0  ;;  %v242_v4 = vsel %vm235_vm0, %v1068_v1, 0.0  ;;  %v1080_v7 = vld [vmem:[%s1064_s17 + $0x18] sm:$0xff]  ;;  %v1083_v8 = vld [vmem:[%s1064_s17 + $0x8] sm:$0xff]  ;;  %v287_v9 = vsel %vm235_vm0, %v188_v6, 0.0 }
  0x12   : > { %v236_v5 = vsel %vm235_vm0, %v1071_v2, 0.0  ;;  %285 = vadd.xlane.f32.xlu2 %v284_v3  ;;  %243 = vadd.xlane.f32.xlu1 %v242_v4  ;;  %v245_v10 = vsel %vm235_vm0, %v1080_v7, 0.0  ;;  %v239_v11 = vsel %vm235_vm0, %v1083_v8, 0.0  ;;  %v1091_v12 = vld [vmem:[%s1064_s17 + $0x20] sm:$0xff]  ;;  %v190_v13 = vld [vmem:[%s1064_s17 + $0x98] sm:$0xff]  ;;  %v189_v14 = vld [vmem:[%s1064_s17 + $0x90] sm:$0xff] }
  0x13   : > { %237 = vadd.xlane.f32.xlu0 %v236_v5  ;;  %v248_v15 = vsel %vm235_vm0, %v1091_v12, 0.0  ;;  %v293_v16 = vsel %vm235_vm0, %v190_v13, 0.0  ;;  %v290_v17 = vsel %vm235_vm0, %v189_v14, 0.0  ;;  %v192_v18 = vld [vmem:[%s1064_s17 + $0xa8] sm:$0xff]  ;;  %v191_v19 = vld [vmem:[%s1064_s17 + $0xa0] sm:$0xff]  ;;  %v205_v24 = vld [vmem:[%s1064_s17 + $0x110] sm:$0xff] }
  0x14   : > { %v1102_v20 = vld [vmem:[%s1064_s17 + $0x28] sm:$0xff]  ;;  %v299_v21 = vsel %vm235_vm0, %v192_v18, 0.0  ;;  %v296_v22 = vsel %vm235_vm0, %v191_v19, 0.0  ;;  %v1111_v26 = vld [vmem:[%s1064_s17 + $0x100] sm:$0xff]  ;;  %v338_v27 = vsel %vm235_vm0, %v205_v24, 0.0  ;;  %v1118_v30 = vld [vmem:[%s1064_s17 + $0x38] sm:$0xff] }
  0x15   : > { %v251_v23 = vsel %vm235_vm0, %v1102_v20, 0.0  ;;  %v204_v25 = vld [vmem:[%s1064_s17 + $0x108] sm:$0xff]  ;;  %1769 = vst [vmem:[#allocation2_spill] sm:$0xff] %v1111_v26  ;;  %v332_v29 = vsel %vm235_vm0, %v1111_v26, 0.0  ;;  %v1121_v31 = vld [vmem:[%s1064_s17 + $0x30] sm:$0xff]  ;;  %v1124_v32 = vld [vmem:[%s1064_s17 + $0x118] sm:$0xff] }
  0x16   : > { %v335_v28 = vsel %vm235_vm0, %v204_v25, 0.0  ;;  %1770 = vst [vmem:[#allocation3_spill] sm:$0xff] %v1124_v32  ;;  %v257_v33 = vsel %vm235_vm0, %v1118_v30, 0.0  ;;  %v254_v34 = vsel %vm235_vm0, %v1121_v31, 0.0  ;;  %v341_v35 = vsel %vm235_vm0, %v1124_v32, 0.0  ;;  %v1133_v36 = vld [vmem:[%s1064_s17 + $0x120] sm:$0xff] }
  0x17   : > { %1771 = vst [vmem:[#allocation4_spill] sm:$0xff] %v1133_v36  ;;  %v194_v37 = vld [vmem:[%s1064_s17 + $0xb8] sm:$0xff]  ;;  %v193_v38 = vld [vmem:[%s1064_s17 + $0xb0] sm:$0xff]  ;;  %v344_v39 = vsel %vm235_vm0, %v1133_v36, 0.0  ;;  %v1142_v42 = vld [vmem:[%s1064_s17 + $0x188] sm:$0xff] }
  0x18   : > { %v305_v40 = vsel %vm235_vm0, %v194_v37, 0.0  ;;  %v302_v41 = vsel %vm235_vm0, %v193_v38, 0.0  ;;  %v1145_v43 = vld [vmem:[%s1064_s17 + $0x180] sm:$0xff]  ;;  %v1148_v44 = vld [vmem:[%s1064_s17 + $0x128] sm:$0xff]  ;;  %v383_v45 = vsel %vm235_vm0, %v1142_v42, 0.0  ;;  %v1160_v49 = vld [vmem:[%s1064_s17 + $0x198] sm:$0xff]  ;;  %v1745_v37 = vlaneseq }
  0x19   : > { %1772 = vst [vmem:[#allocation5_spill] sm:$0xff] %v1148_v44  ;;  %v380_v46 = vsel %vm235_vm0, %v1145_v43, 0.0  ;;  %v347_v47 = vsel %vm235_vm0, %v1148_v44, 0.0  ;;  %v1157_v48 = vld [vmem:[%s1064_s17 + $0x40] sm:$0xff]  ;;  %v1163_v50 = vld [vmem:[%s1064_s17 + $0x190] sm:$0xff]  ;;  %v389_v52 = vsel %vm235_vm0, %v1160_v49, 0.0 }
  0x1a   : > { %288 = vadd.xlane.f32.xlu2 %v287_v9  ;;  %246 = vadd.xlane.f32.xlu1 %v245_v10  ;;  %v260_v51 = vsel %vm235_vm0, %v1157_v48, 0.0  ;;  %v386_v53 = vsel %vm235_vm0, %v1163_v50, 0.0  ;;  %v196_v54 = vld [vmem:[%s1064_s17 + $0xc8] sm:$0xff]  ;;  %v195_v55 = vld [vmem:[%s1064_s17 + $0xc0] sm:$0xff]  ;;  %v1184_v61 = vld [vmem:[%s1064_s17 + $0x138] sm:$0xff] }
  0x1b   : > { %240 = vadd.xlane.f32.xlu0 %v239_v11  ;;  %v1174_v56 = vld [vmem:[%s1064_s17 + $0x48] sm:$0xff]  ;;  %v311_v57 = vsel %vm235_vm0, %v196_v54, 0.0  ;;  %v308_v58 = vsel %vm235_vm0, %v195_v55, 0.0  ;;  %v1181_v60 = vld [vmem:[%s1064_s17 + $0x1a0] sm:$0xff]  ;;  %1773 = vst [vmem:[#allocation6_spill] sm:$0xff] %v1184_v61  ;;  %v1187_v62 = vld [vmem:[%s1064_s17 + $0x130] sm:$0xff] }
  0x1c   : > { %v263_v59 = vsel %vm235_vm0, %v1174_v56, 0.0  ;;  %1774 = vst [vmem:[#allocation7_spill] sm:$0xff] %v1187_v62  ;;  %v392_v63 = vsel %vm235_vm0, %v1181_v60, 0.0  ;;  %v353_v0 = vsel %vm235_vm0, %v1184_v61, 0.0  ;;  %v350_v3 = vsel %vm235_vm0, %v1187_v62, 0.0  ;;  %v1196_v4 = vld [vmem:[%s1064_s17 + $0x58] sm:$0xff] }
  0x1d   : > { %v1199_v5 = vld [vmem:[%s1064_s17 + $0x50] sm:$0xff]  ;;  %v1202_v6 = vld [vmem:[%s1064_s17 + $0x1a8] sm:$0xff]  ;;  %v269_v9 = vsel %vm235_vm0, %v1196_v4, 0.0  ;;  %v1211_v13 = vld [vmem:[%s1064_s17 + $0x140] sm:$0xff] }
  0x1e   : > { %v266_v10 = vsel %vm235_vm0, %v1199_v5, 0.0  ;;  %v395_v11 = vsel %vm235_vm0, %v1202_v6, 0.0  ;;  %1775 = vst [vmem:[#allocation8_spill] sm:$0xff] %v1211_v13  ;;  %v1214_v14 = vld [vmem:[%s1064_s17 + $0xd8] sm:$0xff] }
  0x1f   : > { %1776 = vst [vmem:[#allocation9_spill] sm:$0xff] %v1214_v14  ;;  %v1226_v19 = vld [vmem:[%s1064_s17 + $0x1b8] sm:$0xff] }
  0x20   : > { %v1256_v38 = vld [vmem:[%s1064_s17 + $0x158] sm:$0xff] }
  0x21   : > { %1780 = vst [vmem:[#allocation13_spill] sm:$0xff] %v1256_v38 }
  0x22   : > { %249 = vadd.xlane.f32.xlu2 %v248_v15  ;;  %294 = vadd.xlane.f32.xlu1 %v293_v16  ;;  %v1217_v15 = vld [vmem:[%s1064_s17 + $0xd0] sm:$0xff]  ;;  %v356_v16 = vsel %vm235_vm0, %v1211_v13, 0.0 }
  0x23   : > { %291 = vadd.xlane.f32.xlu0 %v290_v17  ;;  %1777 = vst [vmem:[#allocation10_spill] sm:$0xff] %v1217_v15  ;;  %v317_v17 = vsel %vm235_vm0, %v1214_v14, 0.0  ;;  %v314_v18 = vsel %vm235_vm0, %v1217_v15, 0.0  ;;  %v1385_v15 = vld [vmem:[%s1064_s17 + $0x1f8] sm:$0xff] }
  0x24   : > { %1791 = vst [vmem:[#allocation24_spill] sm:$0xff] %v1385_v15 }
  0x2a   : > { %300 = vadd.xlane.f32.xlu2 %v299_v21  ;;  %297 = vadd.xlane.f32.xlu1 %v296_v22  ;;  %v1229_v21 = vld [vmem:[%s1064_s17 + $0x1b0] sm:$0xff]  ;;  %v1232_v22 = vld [vmem:[%s1064_s17 + $0x148] sm:$0xff] }
  0x2b   : > { %252 = vadd.xlane.f32.xlu0 %v251_v23  ;;  %1778 = vst [vmem:[#allocation11_spill] sm:$0xff] %v1232_v22  ;;  %v401_v23 = vsel %vm235_vm0, %v1226_v19, 0.0  ;;  %v398_v24 = vsel %vm235_vm0, %v1229_v21, 0.0  ;;  %v359_v25 = vsel %vm235_vm0, %v1232_v22, 0.0 }
  0x32   : > { %339 = vadd.xlane.f32.xlu2 %v338_v27  ;;  %336 = vadd.xlane.f32.xlu1 %v335_v28  ;;  %v1241_v27 = vld [vmem:[%s1064_s17 + $0xe0] sm:$0xff]  ;;  %v1244_v28 = vld [vmem:[%s1064_s17 + $0x68] sm:$0xff] }
  0x33   : > { %333 = vadd.xlane.f32.xlu0 %v332_v29  ;;  %1779 = vst [vmem:[#allocation12_spill] sm:$0xff] %v1241_v27  ;;  %v1247_v29 = vld [vmem:[%s1064_s17 + $0x60] sm:$0xff] }
  0x3a   : > { %258 = vadd.xlane.f32.xlu2 %v257_v33  ;;  %255 = vadd.xlane.f32.xlu1 %v254_v34  ;;  %v320_v33 = vsel %vm235_vm0, %v1241_v27, 0.0  ;;  %v275_v34 = vsel %vm235_vm0, %v1244_v28, 0.0 }
  0x3b   : > { %342 = vadd.xlane.f32.xlu0 %v341_v35  ;;  %v272_v35 = vsel %vm235_vm0, %v1247_v29, 0.0 }
  0x42   : > { %345 = vadd.xlane.f32.xlu2 %v344_v39  ;;  %306 = vadd.xlane.f32.xlu1 %v305_v40  ;;  %v1259_v39 = vld [vmem:[%s1064_s17 + $0x150] sm:$0xff] }
  0x43   : > { %303 = vadd.xlane.f32.xlu0 %v302_v41  ;;  %1781 = vst [vmem:[#allocation14_spill] sm:$0xff] %v1259_v39 }
  0x4a   : > { %384 = vadd.xlane.f32.xlu2 %v383_v45  ;;  %381 = vadd.xlane.f32.xlu1 %v380_v46  ;;  %v1262_v45 = vld [vmem:[%s1064_s17 + $0xe8] sm:$0xff] }
  0x4b   : > { %348 = vadd.xlane.f32.xlu0 %v347_v47  ;;  %1782 = vst [vmem:[#allocation15_spill] sm:$0xff] %v1262_v45  ;;  %v365_v47 = vsel %vm235_vm0, %v1256_v38, 0.0 }
  0x52   : > { %261 = vadd.xlane.f32.xlu2 %v260_v51  ;;  %390 = vadd.xlane.f32.xlu1 %v389_v52  ;;  %v362_v51 = vsel %vm235_vm0, %v1259_v39, 0.0  ;;  %v1269_v52 = vand.u32 127, %v1745_v37 }
  0x53   : > { %387 = vadd.xlane.f32.xlu0 %v386_v53  ;;  %v323_v53 = vsel %vm235_vm0, %v1262_v45, 0.0 }
  0x54   : > { %v1274_v54 = vadd.s32 4294967288, %v1269_v52 }
  0x5a   : > { %312 = vadd.xlane.f32.xlu2 %v311_v57  ;;  %309 = vadd.xlane.f32.xlu1 %v308_v58  ;;  %v1279_v58 = vld [vmem:[%s1064_s17 + $0x70] sm:$0xff] }
  0x5b   : > { %264 = vadd.xlane.f32.xlu0 %v263_v59  ;;  %v1282_v59 = vld [vmem:[%s1064_s17 + $0x1c8] sm:$0xff] }
  0x62   : > { %393 = vadd.xlane.f32.xlu2 %v392_v63  ;;  %354 = vadd.xlane.f32.xlu1 %v353_v0 }
  0x63   : > { %351 = vadd.xlane.f32.xlu0 %v350_v3  ;;  %v1285_v3 = vld [vmem:[%s1064_s17 + $0x1c0] sm:$0xff] }
  0x6a   : > { %270 = vadd.xlane.f32.xlu2 %v269_v9  ;;  %267 = vadd.xlane.f32.xlu1 %v266_v10 }
  0x6b   : > { %396 = vadd.xlane.f32.xlu0 %v395_v11 }
  0x72   : > { %357 = vadd.xlane.f32.xlu2 %v356_v16  ;;  %318 = vadd.xlane.f32.xlu1 %v317_v17 }
  0x73   : > { %315 = vadd.xlane.f32.xlu0 %v314_v18  ;;  %v278_v18 = vsel %vm235_vm0, %v1279_v58, 0.0 }
  0x7a   : > { %402 = vadd.xlane.f32.xlu2 %v401_v23  ;;  %399 = vadd.xlane.f32.xlu1 %v398_v24  ;;  %v407_v23 = vsel %vm235_vm0, %v1282_v59, 0.0 }
  0x7b   : > { %360 = vadd.xlane.f32.xlu0 %v359_v25 }
  0x82   : > { %321 = vadd.xlane.f32.xlu2 %v320_v33  ;;  %276 = vadd.xlane.f32.xlu1 %v275_v34  ;;  %v404_v33 = vsel %vm235_vm0, %v1285_v3, 0.0 }
  0x83   : > { %273 = vadd.xlane.f32.xlu0 %v272_v35 }
  0x85   : > { %v286_v40 = vpop.xlane.xlu2 %285  ;;  %v244_v41 = vpop.xlane.xlu1 %243 }
  0x86   : > { %v238_v46 = vpop.xlane.xlu0 %237  ;;  %v520_v55 = vperm.slane %v286_v40, %v1269_v52  ;;  %v499_v57 = vperm.slane %v244_v41, %v1269_v52  ;;  %v1302_v40 = vld [vmem:[%s1064_s17 + $0xf8] sm:$0xff]  ;;  %v1305_v41 = vld [vmem:[%s1064_s17 + $0xf0] sm:$0xff] }
  0x87   : > { %v494_v16 = vperm.slane %v238_v46, %v1269_v52  ;;  %1783 = vst [vmem:[#allocation16_spill] sm:$0xff] %v1302_v40 }
  0x88   : > { %1784 = vst [vmem:[#allocation17_spill] sm:$0xff] %v1305_v41 }
  0x8a   : > { %366 = vadd.xlane.f32.xlu2 %v365_v47  ;;  %363 = vadd.xlane.f32.xlu1 %v362_v51  ;;  %v1308_v51 = vld [vmem:[%s1064_s17 + $0x78] sm:$0xff] }
  0x8b   : > { %324 = vadd.xlane.f32.xlu0 %v323_v53 }
  0x8d   : > { %v289_v63 = vpop.xlane.xlu2 %288  ;;  %v247_v0 = vpop.xlane.xlu1 %246 }
  0x8e   : > { %v521_v9 = vperm.slane %v289_v63, %v1274_v54  ;;  %v500_v10 = vperm.slane %v247_v0, %v1274_v54  ;;  %v241_v11 = vpop.xlane.xlu0 %240  ;;  %v329_v63 = vsel %vm235_vm0, %v1302_v40, 0.0  ;;  %v326_v0 = vsel %vm235_vm0, %v1305_v41, 0.0  ;;  %v1369_v40 = vld [vmem:[%s1064_s17 + $0x1e0] sm:$0xff] }
  0x8f   : > { %v496_v17 = vperm.slane %v241_v11, %v1274_v54 }
  0x90   : > { %v522_v24 = vsel %vm497_vm1, %v521_v9, %v520_v55  ;;  %v501_v25 = vsel %vm497_vm1, %v500_v10, %v499_v57  ;;  %v281_v9 = vsel %vm235_vm0, %v1308_v51, 0.0 }
  0x91   : > { %v498_v34 = vsel %vm497_vm1, %v496_v17, %v494_v16  ;;  %v1321_v16 = vld [vmem:[%s1064_s17 + $0x1d0] sm:$0xff]  ;;  %v1324_v17 = vld [vmem:[%s1064_s17 + $0x168] sm:$0xff] }
  0x92   : > { %v593_v35 = vsel %vm592_vm2, %v501_v25, %v498_v34  ;;  %279 = vadd.xlane.f32.xlu2 %v278_v18  ;;  %408 = vadd.xlane.f32.xlu1 %v407_v23  ;;  %1785 = vst [vmem:[#allocation18_spill] sm:$0xff] %v1324_v17 }
  0x93   : > { %405 = vadd.xlane.f32.xlu0 %v404_v33  ;;  %v1328_v33 = vld [vmem:[%s1064_s17 + $0x160] sm:$0xff] }
  0x94   : > { %1786 = vst [vmem:[#allocation19_spill] sm:$0xff] %v1328_v33 }
  0x95   : > { %v250_v46 = vpop.xlane.xlu2 %249  ;;  %v295_v47 = vpop.xlane.xlu1 %294 }
  0x96   : > { %v524_v53 = vperm.slane %v295_v47, %v1274_v54  ;;  %v292_v55 = vpop.xlane.xlu0 %291  ;;  %v502_v18 = vperm.slane %v250_v46, %v1269_v52  ;;  %v371_v46 = vsel %vm235_vm0, %v1324_v17, 0.0 }
  0x97   : > { %v523_v57 = vperm.slane %v292_v55, %v1269_v52  ;;  %v410_v55 = vsel %vm235_vm0, %v1321_v16, 0.0 }
  0x99   : > { %v525_v10 = vsel %vm497_vm1, %v524_v53, %v523_v57 }
  0x9a   : > { %v606_v11 = vsel %vm592_vm2, %v525_v10, %v522_v24  ;;  %330 = vadd.xlane.f32.xlu2 %v329_v63  ;;  %327 = vadd.xlane.f32.xlu1 %v326_v0  ;;  %v368_v63 = vsel %vm235_vm0, %v1328_v33, 0.0 }
  0x9b   : > { %282 = vadd.xlane.f32.xlu0 %v281_v9 }
  0x9d   : > { %v301_v23 = vpop.xlane.xlu2 %300  ;;  %v298_v25 = vpop.xlane.xlu1 %297 }
  0x9e   : > { %v527_v34 = vperm.slane %v301_v23, %v1274_v54  ;;  %v526_v24 = vperm.slane %v298_v25, %v1269_v52  ;;  %v253_v47 = vpop.xlane.xlu0 %252  ;;  %v1344_v23 = vld [vmem:[%s1064_s17 + $0x178] sm:$0xff]  ;;  %v1347_v25 = vld [vmem:[%s1064_s17 + $0x170] sm:$0xff] }
  0x9f   : > { %v503_v53 = vperm.slane %v253_v47, %v1274_v54  ;;  %1787 = vst [vmem:[#allocation20_spill] sm:$0xff] %v1344_v23 }
  0xa0   : > { %v528_v57 = vsel %vm497_vm1, %v527_v34, %v526_v24  ;;  %1788 = vst [vmem:[#allocation21_spill] sm:$0xff] %v1347_v25  ;;  %v1350_v24 = vld [vmem:[%s1064_s17 + $0x1d8] sm:$0xff] }
  0xa1   : > { %v607_v0 = vsel %vm594_vm3, %v528_v57, %v606_v11  ;;  %v504_v9 = vsel %vm497_vm1, %v503_v53, %v502_v18  ;;  %v374_v53 = vsel %vm235_vm0, %v1347_v25, 0.0 }
  0xa2   : > { %v595_v10 = vsel %vm594_vm3, %v504_v9, %v593_v35  ;;  %411 = vadd.xlane.f32.xlu2 %v410_v55  ;;  %372 = vadd.xlane.f32.xlu1 %v371_v46  ;;  %v377_v35 = vsel %vm235_vm0, %v1344_v23, 0.0  ;;  %v413_v55 = vsel %vm235_vm0, %v1350_v24, 0.0  ;;  %v1365_v9 = vld [vmem:[%s1064_s17 + $0x1f0] sm:$0xff] }
  0xa3   : > { %369 = vadd.xlane.f32.xlu0 %v368_v63  ;;  %v1362_v63 = vld [vmem:[%s1064_s17 + $0x1e8] sm:$0xff]  ;;  %1790 = vst [vmem:[#allocation23_spill] sm:$0xff] %v1365_v9 }
  0xa4   : > { %1789 = vst [vmem:[#allocation22_spill] sm:$0xff] %v1362_v63 }
  0xa5   : > { %v340_v47 = vpop.xlane.xlu2 %339  ;;  %v337_v34 = vpop.xlane.xlu1 %336 }
  0xa6   : > { %v545_v11 = vperm.slane %v337_v34, %v1274_v54  ;;  %v334_v57 = vpop.xlane.xlu0 %333  ;;  %v547_v34 = vperm.slane %v340_v47, %v1269_v52 }
  0xa7   : > { %v544_v18 = vperm.slane %v334_v57, %v1269_v52 }
  0xa9   : > { %v546_v46 = vsel %vm497_vm1, %v545_v11, %v544_v18 }
  0xaa   : > { %378 = vadd.xlane.f32.xlu2 %v377_v35  ;;  %375 = vadd.xlane.f32.xlu1 %v374_v53  ;;  %v419_v35 = vsel %vm235_vm0, %v1362_v63, 0.0  ;;  %v422_v53 = vsel %vm235_vm0, %v1365_v9, 0.0 }
  0xab   : > { %414 = vadd.xlane.f32.xlu0 %v413_v55  ;;  %v416_v55 = vsel %vm235_vm0, %v1369_v40, 0.0 }
  0xad   : > { %v259_v57 = vpop.xlane.xlu2 %258  ;;  %v256_v37 = vpop.xlane.xlu1 %255 }
  0xae   : > { %v506_v41 = vperm.slane %v259_v57, %v1274_v54  ;;  %v505_v45 = vperm.slane %v256_v37, %v1269_v52  ;;  %v343_v11 = vpop.xlane.xlu0 %342 }
  0xaf   : > { %v548_v18 = vperm.slane %v343_v11, %v1274_v54 }
  0xb0   : > { %v507_v47 = vsel %vm497_vm1, %v506_v41, %v505_v45  ;;  %v425_v41 = vsel %vm235_vm0, %v1385_v15, 0.0 }
  0xb1   : > { %v597_v57 = vsel %vm596_vm4, %v507_v47, %v595_v10  ;;  %v549_v27 = vsel %vm497_vm1, %v548_v18, %v547_v34 }
  0xb2   : > { %v613_v37 = vsel %vm592_vm2, %v549_v27, %v546_v46  ;;  %420 = vadd.xlane.f32.xlu1 %v419_v35  ;;  %423 = vadd.xlane.f32.xlu2 %v422_v53 }
  0xb3   : > { %417 = vadd.xlane.f32.xlu0 %v416_v55 }
  0xb5   : > { %v346_v11 = vpop.xlane.xlu2 %345  ;;  %v307_v14 = vpop.xlane.xlu1 %306 }
  0xb6   : > { %v530_v23 = vperm.slane %v307_v14, %v1274_v54  ;;  %v304_v25 = vpop.xlane.xlu0 %303  ;;  %v550_v27 = vperm.slane %v346_v11, %v1269_v52 }
  0xb7   : > { %v529_v45 = vperm.slane %v304_v25, %v1269_v52 }
  0xb9   : > { %v531_v10 = vsel %vm497_vm1, %v530_v23, %v529_v45 }
  0xba   : > { %v1393_v34 = vsel %vm596_vm4, %v531_v10, %v607_v0 }
  0xbb   : > { %426 = vadd.xlane.f32.xlu0 %v425_v41 }
  0xbd   : > { %v385_v46 = vpop.xlane.xlu2 %384  ;;  %v382_v18 = vpop.xlane.xlu1 %381 }
  0xbe   : > { %v569_v35 = vperm.slane %v385_v46, %v1274_v54  ;;  %v568_v14 = vperm.slane %v382_v18, %v1269_v52  ;;  %v349_v53 = vpop.xlane.xlu0 %348 }
  0xbf   : > { %v551_v25 = vperm.slane %v349_v53, %v1274_v54 }
  0xc0   : > { %v570_v47 = vsel %vm497_vm1, %v569_v35, %v568_v14 }
  0xc1   : > { %v552_v55 = vsel %vm497_vm1, %v551_v25, %v550_v27 }
  0xc2   : > { %v614_v23 = vsel %vm594_vm3, %v552_v55, %v613_v37 }
  0xc5   : > { %v262_v0 = vpop.xlane.xlu2 %261  ;;  %v391_v45 = vpop.xlane.xlu1 %390 }
  0xc6   : > { %v572_v41 = vperm.slane %v391_v45, %v1274_v54  ;;  %v388_v11 = vpop.xlane.xlu0 %387  ;;  %v508_v17 = vperm.slane %v262_v0, %v1269_v52 }
  0xc7   : > { %v571_v10 = vperm.slane %v388_v11, %v1269_v52 }
  0xc9   : > { %v573_v46 = vsel %vm497_vm1, %v572_v41, %v571_v10 }
  0xca   : > { %v620_v18 = vsel %vm592_vm2, %v573_v46, %v570_v47 }
  0xcd   : > { %v313_v53 = vpop.xlane.xlu2 %312  ;;  %v310_v33 = vpop.xlane.xlu1 %309 }
  0xce   : > { %v265_v35 = vpop.xlane.xlu0 %264 }
  0xcf   : > { %v509_v27 = vperm.slane %v265_v35, %v1274_v54 }
  0xd1   : > { %v510_v37 = vsel %vm497_vm1, %v509_v27, %v508_v17 }
  0xd2   : > { %v599_v14 = vsel %vm598_vm5, %v510_v37, %v597_v57 }
  0xd5   : > { %v394_v25 = vpop.xlane.xlu2 %393  ;;  %v355_v55 = vpop.xlane.xlu1 %354 }
  0xd6   : > { %v554_v45 = vperm.slane %v355_v55, %v1274_v54  ;;  %v352_v11 = vpop.xlane.xlu0 %351  ;;  %v574_v10 = vperm.slane %v394_v25, %v1269_v52 }
  0xd7   : > { %v553_v41 = vperm.slane %v352_v11, %v1269_v52 }
  0xd9   : > { %v555_v47 = vsel %vm497_vm1, %v554_v45, %v553_v41 }
  0xda   : > { %v1414_v0 = vsel %vm596_vm4, %v555_v47, %v614_v23 }
  0xdd   : > { %v271_v46 = vpop.xlane.xlu2 %270  ;;  %v268_v35 = vpop.xlane.xlu1 %267 }
  0xde   : > { %v397_v38 = vpop.xlane.xlu0 %396  ;;  %v512_v32 = vperm.slane %v271_v46, %v1274_v54  ;;  %v511_v26 = vperm.slane %v268_v35, %v1269_v52 }
  0xdf   : > { %v575_v17 = vperm.slane %v397_v38, %v1274_v54 }
  0xe1   : > { %v576_v57 = vsel %vm497_vm1, %v575_v17, %v574_v10  ;;  %v533_v10 = vperm.slane %v313_v53, %v1274_v54 }
  0xe2   : > { %v1420_v27 = vsel %vm594_vm3, %v576_v57, %v620_v18  ;;  %v532_v18 = vperm.slane %v310_v33, %v1269_v52 }
  0xe4   : > { %v534_v62 = vsel %vm497_vm1, %v533_v10, %v532_v18 }
  0xe5   : > { %v1422_v37 = vpop.xlane.xlu2 %357  ;;  %v319_v55 = vpop.xlane.xlu1 %318  ;;  %v609_v63 = vsel %vm598_vm5, %v534_v62, %v1393_v34 }
  0xe6   : > { %v316_v11 = vpop.xlane.xlu0 %315  ;;  %v536_v44 = vperm.slane %v319_v55, %v1274_v54  ;;  %v513_v55 = vsel %vm497_vm1, %v512_v32, %v511_v26 }
  0xe7   : > { %v535_v36 = vperm.slane %v316_v11, %v1269_v52  ;;  %v601_v62 = vsel %vm600_vm6, %v513_v55, %v599_v14  ;;  %v556_v14 = vperm.slane %v1422_v37, %v1269_v52 }
  0xe9   : > { %v537_v10 = vsel %vm497_vm1, %v536_v44, %v535_v36 }
  0xea   : > { %v610_v44 = vsel %vm600_vm6, %v537_v10, %v609_v63 }
  0xed   : > { %v1424_v45 = vpop.xlane.xlu2 %402  ;;  %v1426_v23 = vpop.xlane.xlu1 %399 }
  0xee   : > { %v361_v41 = vpop.xlane.xlu0 %360 }
  0xef   : > { %v557_v55 = vperm.slane %v361_v41, %v1274_v54 }
  0xf5   : > { %v322_v25 = vpop.xlane.xlu2 %321  ;;  %v277_v47 = vpop.xlane.xlu1 %276 }
  0xf6   : > { %v274_v39 = vpop.xlane.xlu0 %273  ;;  %v538_v15 = vperm.slane %v322_v25, %v1269_v52  ;;  %v515_v33 = vperm.slane %v277_v47, %v1274_v54 }
  0xf7   : > { %v514_v9 = vperm.slane %v274_v39, %v1269_v52 }
  0xfd   : > { %v367_v22 = vpop.xlane.xlu2 %366  ;;  %v364_v13 = vpop.xlane.xlu1 %363 }
  0xfe   : > { %v325_v38 = vpop.xlane.xlu0 %324 }
  0xff   : > { %v539_v53 = vperm.slane %v325_v38, %v1274_v54  ;;  %v516_v38 = vsel %vm497_vm1, %v515_v33, %v514_v9 }
 0x100   : > { %v603_v34 = vsel %vm602_vm7, %v516_v38, %v601_v62 }
 0x101   : > { %v540_v46 = vsel %vm497_vm1, %v539_v53, %v538_v15 }
 0x102   : > { %v611_v32 = vsel %vm602_vm7, %v540_v46, %v610_v44  ;;  %v560_v46 = vperm.slane %v367_v22, %v1274_v54 }
 0x105   : > { %v280_v17 = vpop.xlane.xlu2 %279  ;;  %v1430_v57 = vpop.xlane.xlu1 %408 }
 0x106   : > { %v1432_v61 = vpop.xlane.xlu0 %405  ;;  %v517_v35 = vperm.slane %v280_v17, %v1269_v52 }
 0x10d   : > { %v331_v11 = vpop.xlane.xlu2 %330  ;;  %v328_v25 = vpop.xlane.xlu1 %327 }
 0x10e   : > { %v542_v47 = vperm.slane %v331_v11, %v1274_v54  ;;  %v541_v39 = vperm.slane %v328_v25, %v1269_v52  ;;  %v283_v18 = vpop.xlane.xlu0 %282 }
 0x10f   : > { %v518_v36 = vperm.slane %v283_v18, %v1274_v54 }
 0x110   : > { %v543_v26 = vsel %vm497_vm1, %v542_v47, %v541_v39  ;;  %v558_v47 = vsel %vm497_vm1, %v557_v55, %v556_v14 }
 0x111   : > { %v612_v15 = vsel %vm604_vm8, %v543_v26, %v611_v32  ;;  %v519_v9 = vsel %vm497_vm1, %v518_v36, %v517_v35  ;;  %v559_v35 = vperm.slane %v364_v13, %v1269_v52  ;;  %v616_v37 = vsel %vm598_vm5, %v558_v47, %v1414_v0 }
 0x112   : > { %v634_v17 = vsel %vm235_vm0, %v612_v15, 0.0  ;;  %v605_v53 = vsel %vm604_vm8, %v519_v9, %v603_v34  ;;  %v578_v0 = vperm.slane %v1424_v45, %v1274_v54 }
 0x113   : > { %635 = vadd.xlane.f32.xlu2 %v634_v17  ;;  %v631_v33 = vsel %vm235_vm0, %v605_v53, 0.0  ;;  %v561_v39 = vsel %vm497_vm1, %v560_v46, %v559_v35  ;;  %v577_v17 = vperm.slane %v1426_v23, %v1269_v52 }
 0x114   : > { %632 = vadd.xlane.f32.xlu1 %v631_v33  ;;  %v617_v26 = vsel %vm600_vm6, %v561_v39, %v616_v37  ;;  %v581_v33 = vperm.slane %v1430_v57, %v1274_v54 }
 0x115   : > { %v412_v63 = vpop.xlane.xlu2 %411  ;;  %v373_v10 = vpop.xlane.xlu1 %372  ;;  %v579_v45 = vsel %vm497_vm1, %v578_v0, %v577_v17  ;;  %v658_v17 = vadd.s32 4294967272, %v1269_v52 }
 0x116   : > { %v370_v11 = vpop.xlane.xlu0 %369  ;;  %v563_v25 = vperm.slane %v373_v10, %v1274_v54  ;;  %v580_v10 = vperm.slane %v1432_v61, %v1269_v52  ;;  %v622_v61 = vsel %vm596_vm4, %v579_v45, %v1420_v27  ;;  %v646_v27 = vld [vmem:[%s1742_s1 + $0x18] sm:$0xff] }
 0x117   : > { %v562_v38 = vperm.slane %v370_v11, %v1269_v52  ;;  %v583_v11 = vperm.slane %v412_v63, %v1269_v52  ;;  %677 = vmatpush.msra.mxu0 %v646_v27 }
 0x118   : > { %v582_v23 = vsel %vm497_vm1, %v581_v33, %v580_v10 }
 0x119   : > { %v564_v18 = vsel %vm497_vm1, %v563_v25, %v562_v38  ;;  %v623_v47 = vsel %vm598_vm5, %v582_v23, %v622_v61 }
 0x11a   : > { %v618_v62 = vsel %vm602_vm7, %v564_v18, %v617_v26  ;;  %v643_v26 = vld [vmem:[%s1742_s1] sm:$0xff] }
 0x11d   : > { %v379_v36 = vpop.xlane.xlu2 %378  ;;  %v376_v44 = vpop.xlane.xlu1 %375 }
 0x11e   : > { %v566_v41 = vperm.slane %v379_v36, %v1274_v54  ;;  %v565_v22 = vperm.slane %v376_v44, %v1269_v52  ;;  %v415_v13 = vpop.xlane.xlu0 %414 }
 0x11f   : > { %v584_v14 = vperm.slane %v415_v13, %v1274_v54  ;;  %v644_v13 = vld [vmem:[%s1742_s1 + $0x8] sm:$0xff] }
 0x120   : > { %v567_v32 = vsel %vm497_vm1, %v566_v41, %v565_v22  ;;  %v645_v22 = vld [vmem:[%s1742_s1 + $0x10] sm:$0xff] }
 0x121   : > { %v619_v15 = vsel %vm604_vm8, %v567_v32, %v618_v62  ;;  %v585_v25 = vsel %vm497_vm1, %v584_v14, %v583_v11  ;;  %678 = vmatpush.msra.mxu0 %v645_v22 }
 0x122   : > { %v637_v9 = vsel %vm235_vm0, %v619_v15, 0.0  ;;  %v624_v18 = vsel %vm600_vm6, %v585_v25, %v623_v47  ;;  %v654_v15 = vadd.s32 4294967280, %v1269_v52 }
 0x123   : > { %638 = vadd.xlane.f32.xlu0 %v637_v9  ;;  %679 = vmatpush.msra.mxu0 %v644_v13 }
 0x125   : > { %v421_v53 = vpop.xlane.xlu1 %420  ;;  %v424_v35 = vpop.xlane.xlu2 %423  ;;  %680 = vmatpush.msra.mxu0 %v643_v26 }
 0x126   : > { %v418_v34 = vpop.xlane.xlu0 %417  ;;  %v587_v55 = vperm.slane %v421_v53, %v1274_v54  ;;  %v589_v57 = vperm.slane %v424_v35, %v1269_v52  ;;  %v1792_v35 = vlaneseq }
 0x127   : > { %v586_v46 = vperm.slane %v418_v34, %v1269_v52 }
 0x128   : > { %v736_v45 = vshrl.u32 %v1792_v35, 7 }
 0x129   : > { %v588_v63 = vsel %vm497_vm1, %v587_v55, %v586_v46  ;;  %v686_v46 = vld [vmem:[%s1743_s2] sm:$0x3] }
 0x12a   : > { %v625_v44 = vsel %vm602_vm7, %v588_v63, %v624_v18  ;;  %984 = vmatpush.msk.msra.mxu1 %vm691_vm12, %v686_v46  ;;  %999 = vset.pattern.permute.xlu2 %v736_v45  ;;  %v749_v23 = vadd.s32 16, %v736_v45  ;;  %v743_v25 = vadd.s32 8, %v736_v45 }
 0x12c   : > { %1001 = vset.pattern.permute.xlu1 %v749_v23  ;;  %1000 = vset.pattern.permute.xlu0 %v743_v25 }
 0x12e   : > { %v427_v38 = vpop.xlane.xlu0 %426 }
 0x12f   : > { %v590_v39 = vperm.slane %v427_v38, %v1274_v54 }
 0x131   : > { %v591_v36 = vsel %vm497_vm1, %v590_v39, %v589_v57 }
 0x132   : > { %v626_v37 = vsel %vm604_vm8, %v591_v36, %v625_v44 }
 0x133   : > { %v640_v41 = vsel %vm235_vm0, %v626_v37, 0.0 }
 0x134   : > { %641 = vadd.xlane.f32.xlu1 %v640_v41 }
 0x186   : > { %v636_v62 = vpop.xlane.xlu2 %635 }
 0x187   : > { %v633_v32 = vpop.xlane.xlu1 %632  ;;  %v652_v34 = vperm.slane %v636_v62, %v1274_v54 }
 0x188   : > { %v651_v0 = vperm.slane %v633_v32, %v1269_v52  ;;  %v755_v32 = vadd.s32 24, %v736_v45 }
 0x18a   : > { %v653_v10 = vsel %vm497_vm1, %v652_v34, %v651_v0 }
 0x196   : > { %v639_v9 = vpop.xlane.xlu0 %638 }
 0x197   : > { %v655_v53 = vperm.slane %v639_v9, %v654_v15 }
 0x199   : > { %v657_v14 = vsel %vm656_vm9, %v655_v53, %v653_v10 }
 0x1a7   : > { %v642_v33 = vpop.xlane.xlu1 %641 }
 0x1a8   : > { %v659_v11 = vperm.slane %v642_v33, %v658_v17 }
 0x1aa   : > { %v661_v55 = vsel %vm660_vm10, %v659_v11, %v657_v14 }
 0x1ab   : > { %983 = vmatmul.msk.f32.vlgmr.msra.gmra.mxu0 %vm662_vm11, %v661_v55 }
 0x228   : > { %v682_v54 = vpop.f32.mrf.mxu0 }
 0x229   : > { %v685_v52 = vmax.f32 %v682_v54, 0.0 }
 0x22b   : > { %985 = vmatmul.msk.f32.vlgmr.msra.gmra.mxu1 %vm687_vm13, %v685_v52 }
 0x2a8   : > { %v712_v57 = vpop.f32.mrf.mxu1 }
 0x2a9   : > { %v986_v61 = vmul.f32 -1.442695, %v712_v57 }
 0x2ab   : > { %1004 = vpow2.f32 %v986_v61 }
 0x2b1   : > { %v1005_v63 = vpop.eup %1004 }
 0x2b2   : > { %v718_v38 = vadd.f32 1.0, %v1005_v63 }
 0x2b4   : > { %1006 = vrcp.f32 %v718_v38  ;;  %v730_v36 = vand.u32 2147483648, %v718_v38  ;;  %v728_v37 = vand.u32 2147483647, %v718_v38  ;;  %vm724_vm15 = vweird.f32 %v718_v38 }
 0x2b6   : > { %v731_v27 = vor.u32 1.1754944e-38, %v730_v36  ;;  %vm729_vm2 = vcmp.eq.f32.partialorder %v728_v37, 8.507059e+37  ;;  %v1795_v36 = vld [vmem:[#allocation24_spill] sm:$0xff]  ;;  %v1796_v37 = vld [vmem:[#allocation2_spill] sm:$0xff] }
 0x2ba   : > { %v1007_v47 = vpop.eup %1006 }
 0x2bb   : > { %v720_v39 = vmul.f32 %v1007_v47, %v718_v38  ;;  %vm725_vm14 = vweird.f32 %v1007_v47 }
 0x2bc   : > { %vm726_vm1 = vmor %vm724_vm15, %vm725_vm14 }
 0x2bd   : > { %v721_v18 = vsub.f32 1.0, %v720_v39 }
 0x2bf   : > { %v722_v44 = vmul.f32 %v1007_v47, %v721_v18 }
 0x2c1   : > { %v723_v41 = vadd.f32 %v1007_v47, %v722_v44 }
 0x2c3   : > { %v727_v22 = vsel %vm726_vm1, %v1007_v47, %v723_v41  ;;  %v1793_v47 = vld [vmem:[#allocation22_spill] sm:$0xff] }
 0x2c4   : > { %v732_v13 = vsel %vm729_vm2, %v731_v27, %v727_v22  ;;  %v1008_v27 = vld [vmem:[%s1064_s17 + $0x108] sm:$0xff] }
 0x2c5   : > { %v734_v26 = vperm.slane %v732_v13, 0 }
 0x2c7   : > { %751 = vperm.xlu1 %1001, %v734_v26   ;;  %745 = vperm.xlu0 %1000, %v734_v26  }
 0x2c8   : > { %739 = vperm.xlu2 %999, %v734_v26  }
 0x2cf   : > { %1003 = vset.pattern.permute.xlu0 %v755_v32 }
 0x2d0   : > { %1002 = vset.pattern.permute.xlu2 %v755_v32 }
 0x2d8   : > { %757 = vperm.xlu2 %1002, %v734_v26   ;;  %v1009_v26 = vld [vmem:[%s1064_s17 + $0x110] sm:$0xff] }
 0x322   : > { %v740_v62 = vpop.permute.xlu2 %739 }
 0x323   : > { %v759_v15 = vperm.slane %v740_v62, 0  ;;  %v760_v9 = vperm.slane %v740_v62, 1  ;;  %v761_v34 = vperm.slane %v740_v62, 2  ;;  %v762_v0 = vperm.slane %v740_v62, 3 }
 0x324   : > { %v763_v11 = vperm.slane %v740_v62, 4 }
 0x325   : > { %v791_v17 = vmul.f32 %v759_v15, %v1071_v2  ;;  %v792_v53 = vmul.f32 %v759_v15, %v1083_v8  ;;  %v793_v33 = vmul.f32 %v760_v9, %v1068_v1  ;;  %v794_v10 = vmul.f32 %v760_v9, %v1080_v7 }
 0x326   : > { %v795_v14 = vmul.f32 %v761_v34, %v1091_v12  ;;  %v796_v55 = vmul.f32 %v761_v34, %v1102_v20  ;;  %v764_v2 = vperm.slane %v740_v62, 5  ;;  %v797_v8 = vmul.f32 %v762_v0, %v1121_v31  ;;  %v1798_v34 = vld [vmem:[#allocation4_spill] sm:$0xff] }
 0x327   : > { %855 = vst.msk [vmem:[%s1534_s30] sm:$0xff] %vm235_vm0, %v791_v17  ;;  %v798_v1 = vmul.f32 %v762_v0, %v1118_v30  ;;  %v765_v7 = vperm.slane %v740_v62, 6  ;;  %v799_v12 = vmul.f32 %v763_v11, %v1157_v48  ;;  %v800_v20 = vmul.f32 %v763_v11, %v1174_v56  ;;  %v1799_v17 = vld [vmem:[#allocation5_spill] sm:$0xff] }
 0x328   : > { %856 = vst.msk [vmem:[%s1534_s30 + $0x8] sm:$0xff] %vm235_vm0, %v792_v53  ;;  %v766_v31 = vperm.slane %v740_v62, 7  ;;  %v801_v46 = vmul.f32 %v764_v2, %v1199_v5  ;;  %v802_v30 = vmul.f32 %v764_v2, %v1196_v4  ;;  %v1797_v62 = vld [vmem:[#allocation3_spill] sm:$0xff] }
 0x329   : > { %857 = vst.msk [vmem:[%s1534_s30 + $0x10] sm:$0xff] %vm235_vm0, %v793_v33  ;;  %v803_v48 = vmul.f32 %v765_v7, %v1247_v29  ;;  %v804_v56 = vmul.f32 %v765_v7, %v1244_v28  ;;  %v1803_v7 = vld [vmem:[#allocation11_spill] sm:$0xff] }
 0x32a   : > { %858 = vst.msk [vmem:[%s1534_s30 + $0x18] sm:$0xff] %vm235_vm0, %v794_v10  ;;  %v805_v54 = vmul.f32 %v766_v31, %v1279_v58  ;;  %v806_v5 = vmul.f32 %v766_v31, %v1308_v51  ;;  %v1800_v10 = vld [vmem:[#allocation7_spill] sm:$0xff] }
 0x32b   : > { %859 = vst.msk [vmem:[%s1534_s30 + $0x20] sm:$0xff] %vm235_vm0, %v795_v14  ;;  %v1801_v14 = vld [vmem:[#allocation6_spill] sm:$0xff] }
 0x32c   : > { %860 = vst.msk [vmem:[%s1534_s30 + $0x28] sm:$0xff] %vm235_vm0, %v796_v55 }
 0x32d   : > { %861 = vst.msk [vmem:[%s1534_s30 + $0x30] sm:$0xff] %vm235_vm0, %v797_v8  ;;  %v1802_v8 = vld [vmem:[#allocation8_spill] sm:$0xff] }
 0x32e   : > { %862 = vst.msk [vmem:[%s1534_s30 + $0x38] sm:$0xff] %vm235_vm0, %v798_v1 }
 0x32f   : > { %863 = vst.msk [vmem:[%s1534_s30 + $0x40] sm:$0xff] %vm235_vm0, %v799_v12 }
 0x330   : > { %864 = vst.msk [vmem:[%s1534_s30 + $0x48] sm:$0xff] %vm235_vm0, %v800_v20 }
 0x331   : > { %865 = vst.msk [vmem:[%s1534_s30 + $0x50] sm:$0xff] %vm235_vm0, %v801_v46  ;;  %v1804_v46 = vld [vmem:[#allocation14_spill] sm:$0xff] }
 0x332   : > { %866 = vst.msk [vmem:[%s1534_s30 + $0x58] sm:$0xff] %vm235_vm0, %v802_v30  ;;  %v758_v4 = vpop.permute.xlu2 %757 }
 0x333   : > { %867 = vst.msk [vmem:[%s1534_s30 + $0x60] sm:$0xff] %vm235_vm0, %v803_v48  ;;  %v783_v29 = vperm.slane %v758_v4, 0  ;;  %v784_v52 = vperm.slane %v758_v4, 1  ;;  %v785_v35 = vperm.slane %v758_v4, 2  ;;  %v786_v28 = vperm.slane %v758_v4, 3  ;;  %v1805_v48 = vld [vmem:[#allocation13_spill] sm:$0xff] }
 0x334   : > { %868 = vst.msk [vmem:[%s1534_s30 + $0x68] sm:$0xff] %vm235_vm0, %v804_v56  ;;  %v787_v25 = vperm.slane %v758_v4, 4  ;;  %v790_v63 = vperm.slane %v758_v4, 7 }
 0x335   : > { %869 = vst.msk [vmem:[%s1534_s30 + $0x70] sm:$0xff] %vm235_vm0, %v805_v54  ;;  %v839_v58 = vmul.f32 %v783_v29, %v1145_v43  ;;  %v840_v51 = vmul.f32 %v783_v29, %v1142_v42  ;;  %v841_v45 = vmul.f32 %v784_v52, %v1163_v50  ;;  %v842_v23 = vmul.f32 %v784_v52, %v1160_v49  ;;  %v1806_v54 = vld [vmem:[#allocation19_spill] sm:$0xff]  ;;  %v1807_v29 = vld [vmem:[#allocation18_spill] sm:$0xff] }
 0x336   : > { %870 = vst.msk [vmem:[%s1534_s30 + $0x78] sm:$0xff] %vm235_vm0, %v806_v5  ;;  %v843_v57 = vmul.f32 %v785_v35, %v1181_v60  ;;  %v844_v61 = vmul.f32 %v785_v35, %v1202_v6  ;;  %v788_v42 = vperm.slane %v758_v4, 5  ;;  %v845_v43 = vmul.f32 %v786_v28, %v1229_v21  ;;  %v1808_v35 = vld [vmem:[#allocation21_spill] sm:$0xff] }
 0x337   : > { %903 = vst.msk [vmem:[%s1534_s30 + $0x180] sm:$0xff] %vm235_vm0, %v839_v58  ;;  %v846_v50 = vmul.f32 %v786_v28, %v1226_v19  ;;  %v789_v49 = vperm.slane %v758_v4, 6  ;;  %v847_v60 = vmul.f32 %v787_v25, %v1285_v3  ;;  %v848_v6 = vmul.f32 %v787_v25, %v1282_v59  ;;  %v1010_v25 = vld [vmem:[%s1064_s17 + $0x80] sm:$0xff] }
 0x338   : > { %904 = vst.msk [vmem:[%s1534_s30 + $0x188] sm:$0xff] %vm235_vm0, %v840_v51  ;;  %v849_v38 = vmul.f32 %v788_v42, %v1321_v16  ;;  %v850_v19 = vmul.f32 %v788_v42, %v1350_v24  ;;  %v1794_v16 = vld [vmem:[#allocation23_spill] sm:$0xff]  ;;  %v854_v44 = vmul.f32 %v790_v63, %v1795_v36  ;;  %v1809_v51 = vld [vmem:[#allocation20_spill] sm:$0xff]  ;;  %v1018_v36 = vld [vmem:[%s1064_s17 + $0xc0] sm:$0xff] }
 0x339   : > { %905 = vst.msk [vmem:[%s1534_s30 + $0x190] sm:$0xff] %vm235_vm0, %v841_v45  ;;  %v752_v21 = vpop.permute.xlu1 %751  ;;  %v851_v3 = vmul.f32 %v789_v49, %v1369_v40  ;;  %v852_v39 = vmul.f32 %v789_v49, %v1793_v47  ;;  %v853_v18 = vmul.f32 %v790_v63, %v1794_v16  ;;  %v1654_v20 = vpop.permute.xlu0 %745  ;;  %v1014_v63 = vld [vmem:[%s1064_s17 + $0xa0] sm:$0xff]  ;;  %v1016_v47 = vld [vmem:[%s1064_s17 + $0xb0] sm:$0xff]  ;;  %v1017_v16 = vld [vmem:[%s1064_s17 + $0xb8] sm:$0xff] }
 0x33a   : > { %906 = vst.msk [vmem:[%s1534_s30 + $0x198] sm:$0xff] %vm235_vm0, %v842_v23  ;;  %v775_v59 = vperm.slane %v752_v21, 0  ;;  %v776_v24 = vperm.slane %v752_v21, 1  ;;  %v777_v40 = vperm.slane %v752_v21, 2  ;;  %v778_v13 = vperm.slane %v752_v21, 3 }
 0x33b   : > { %907 = vst.msk [vmem:[%s1534_s30 + $0x1a0] sm:$0xff] %vm235_vm0, %v843_v57  ;;  %v779_v9 = vperm.slane %v752_v21, 4  ;;  %v780_v33 = vperm.slane %v752_v21, 5  ;;  %v781_v2 = vperm.slane %v752_v21, 6  ;;  %v782_v31 = vperm.slane %v752_v21, 7 }
 0x33c   : > { %908 = vst.msk [vmem:[%s1534_s30 + $0x1a8] sm:$0xff] %vm235_vm0, %v844_v61  ;;  %v823_v41 = vmul.f32 %v775_v59, %v1796_v37  ;;  %v824_v22 = vmul.f32 %v1008_v27, %v775_v59  ;;  %v825_v32 = vmul.f32 %v1009_v26, %v776_v24  ;;  %v826_v15 = vmul.f32 %v776_v24, %v1797_v62  ;;  %v1011_v61 = vld [vmem:[%s1064_s17 + $0x88] sm:$0xff]  ;;  %v1810_v27 = vld [vmem:[#allocation10_spill] sm:$0xff] }
 0x33d   : > { %909 = vst.msk [vmem:[%s1534_s30 + $0x1b0] sm:$0xff] %vm235_vm0, %v845_v43  ;;  %v827_v0 = vmul.f32 %v777_v40, %v1798_v34  ;;  %v828_v53 = vmul.f32 %v777_v40, %v1799_v17  ;;  %v829_v11 = vmul.f32 %v778_v13, %v1800_v10  ;;  %v830_v55 = vmul.f32 %v778_v13, %v1801_v14  ;;  %v1019_v40 = vld [vmem:[%s1064_s17 + $0xc8] sm:$0xff]  ;;  %v1811_v13 = vld [vmem:[#allocation9_spill] sm:$0xff]  ;;  %v1815_v17 = vld [vmem:[#allocation16_spill] sm:$0xff] }
 0x33e   : > { %910 = vst.msk [vmem:[%s1534_s30 + $0x1b8] sm:$0xff] %vm235_vm0, %v846_v50  ;;  %v831_v1 = vmul.f32 %v779_v9, %v1802_v8  ;;  %v832_v12 = vmul.f32 %v779_v9, %v1803_v7  ;;  %v833_v30 = vmul.f32 %v780_v33, %v1804_v46  ;;  %v834_v56 = vmul.f32 %v780_v33, %v1805_v48  ;;  %v1012_v50 = vld [vmem:[%s1064_s17 + $0x90] sm:$0xff]  ;;  %v1814_v34 = vld [vmem:[#allocation17_spill] sm:$0xff] }
 0x33f   : > { %911 = vst.msk [vmem:[%s1534_s30 + $0x1c0] sm:$0xff] %vm235_vm0, %v847_v60  ;;  %v835_v5 = vmul.f32 %v781_v2, %v1806_v54  ;;  %v767_v4 = vperm.slane %v1654_v20, 0  ;;  %v836_v52 = vmul.f32 %v781_v2, %v1807_v29  ;;  %v837_v28 = vmul.f32 %v782_v31, %v1808_v35  ;;  %v1013_v60 = vld [vmem:[%s1064_s17 + $0x98] sm:$0xff] }
 0x340   : > { %912 = vst.msk [vmem:[%s1534_s30 + $0x1c8] sm:$0xff] %vm235_vm0, %v848_v6  ;;  %v768_v58 = vperm.slane %v1654_v20, 1  ;;  %v838_v45 = vmul.f32 %v782_v31, %v1809_v51  ;;  %v769_v23 = vperm.slane %v1654_v20, 2  ;;  %v770_v43 = vperm.slane %v1654_v20, 3 }
 0x341   : > { %913 = vst.msk [vmem:[%s1534_s30 + $0x1d0] sm:$0xff] %vm235_vm0, %v849_v38  ;;  %v807_v57 = vmul.f32 %v1010_v25, %v767_v4  ;;  %v808_v42 = vmul.f32 %v1011_v61, %v767_v4  ;;  %v771_v21 = vperm.slane %v1654_v20, 4  ;;  %v772_v59 = vperm.slane %v1654_v20, 5 }
 0x342   : > { %914 = vst.msk [vmem:[%s1534_s30 + $0x1d8] sm:$0xff] %vm235_vm0, %v850_v19  ;;  %v809_v49 = vmul.f32 %v1012_v50, %v768_v58  ;;  %v810_v6 = vmul.f32 %v1013_v60, %v768_v58  ;;  %v811_v38 = vmul.f32 %v1014_v63, %v769_v23  ;;  %v1015_v19 = vld [vmem:[%s1064_s17 + $0xa8] sm:$0xff]  ;;  %v773_v24 = vperm.slane %v1654_v20, 6 }
 0x343   : > { %915 = vst.msk [vmem:[%s1534_s30 + $0x1e0] sm:$0xff] %vm235_vm0, %v851_v3  ;;  %v812_v3 = vmul.f32 %v1015_v19, %v769_v23  ;;  %v816_v37 = vmul.f32 %v1019_v40, %v771_v21  ;;  %v818_v26 = vmul.f32 %v772_v59, %v1811_v13 }
 0x344   : > { %916 = vst.msk [vmem:[%s1534_s30 + $0x1e8] sm:$0xff] %vm235_vm0, %v852_v39  ;;  %v813_v39 = vmul.f32 %v1016_v47, %v770_v43 }
 0x345   : > { %917 = vst.msk [vmem:[%s1534_s30 + $0x1f0] sm:$0xff] %vm235_vm0, %v853_v18  ;;  %v814_v18 = vmul.f32 %v1017_v16, %v770_v43 }
 0x346   : > { %918 = vst.msk [vmem:[%s1534_s30 + $0x1f8] sm:$0xff] %vm235_vm0, %v854_v44  ;;  %v815_v44 = vmul.f32 %v1018_v36, %v771_v21 }
 0x347   : > { %887 = vst.msk [vmem:[%s1534_s30 + $0x100] sm:$0xff] %vm235_vm0, %v823_v41  ;;  %v774_v41 = vperm.slane %v1654_v20, 7 }
 0x348   : > { %888 = vst.msk [vmem:[%s1534_s30 + $0x108] sm:$0xff] %vm235_vm0, %v824_v22  ;;  %v817_v22 = vmul.f32 %v772_v59, %v1810_v27 }
 0x349   : > { %889 = vst.msk [vmem:[%s1534_s30 + $0x110] sm:$0xff] %vm235_vm0, %v825_v32  ;;  %v1812_v32 = vld [vmem:[#allocation12_spill] sm:$0xff] }
 0x34a   : > { %890 = vst.msk [vmem:[%s1534_s30 + $0x118] sm:$0xff] %vm235_vm0, %v826_v15  ;;  %v819_v62 = vmul.f32 %v773_v24, %v1812_v32  ;;  %v1813_v15 = vld [vmem:[#allocation15_spill] sm:$0xff] }
 0x34b   : > { %891 = vst.msk [vmem:[%s1534_s30 + $0x120] sm:$0xff] %vm235_vm0, %v827_v0  ;;  %v820_v9 = vmul.f32 %v773_v24, %v1813_v15  ;;  %v821_v0 = vmul.f32 %v774_v41, %v1814_v34 }
 0x34c   : > { %892 = vst.msk [vmem:[%s1534_s30 + $0x128] sm:$0xff] %vm235_vm0, %v828_v53  ;;  %v822_v53 = vmul.f32 %v774_v41, %v1815_v17 }
 0x34d   : > { %893 = vst.msk [vmem:[%s1534_s30 + $0x130] sm:$0xff] %vm235_vm0, %v829_v11 }
 0x34e   : > { %894 = vst.msk [vmem:[%s1534_s30 + $0x138] sm:$0xff] %vm235_vm0, %v830_v55 }
 0x34f   : > { %895 = vst.msk [vmem:[%s1534_s30 + $0x140] sm:$0xff] %vm235_vm0, %v831_v1 }
 0x350   : > { %896 = vst.msk [vmem:[%s1534_s30 + $0x148] sm:$0xff] %vm235_vm0, %v832_v12 }
 0x351   : > { %897 = vst.msk [vmem:[%s1534_s30 + $0x150] sm:$0xff] %vm235_vm0, %v833_v30 }
 0x352   : > { %898 = vst.msk [vmem:[%s1534_s30 + $0x158] sm:$0xff] %vm235_vm0, %v834_v56 }
 0x353   : > { %899 = vst.msk [vmem:[%s1534_s30 + $0x160] sm:$0xff] %vm235_vm0, %v835_v5 }
 0x354   : > { %900 = vst.msk [vmem:[%s1534_s30 + $0x168] sm:$0xff] %vm235_vm0, %v836_v52 }
 0x355   : > { %901 = vst.msk [vmem:[%s1534_s30 + $0x170] sm:$0xff] %vm235_vm0, %v837_v28 }
 0x356   : > { %902 = vst.msk [vmem:[%s1534_s30 + $0x178] sm:$0xff] %vm235_vm0, %v838_v45 }
 0x357   : > { %871 = vst.msk [vmem:[%s1534_s30 + $0x80] sm:$0xff] %vm235_vm0, %v807_v57 }
 0x358   : > { %872 = vst.msk [vmem:[%s1534_s30 + $0x88] sm:$0xff] %vm235_vm0, %v808_v42 }
 0x359   : > { %873 = vst.msk [vmem:[%s1534_s30 + $0x90] sm:$0xff] %vm235_vm0, %v809_v49 }
 0x35a   : > { %874 = vst.msk [vmem:[%s1534_s30 + $0x98] sm:$0xff] %vm235_vm0, %v810_v6 }
 0x35b   : > { %875 = vst.msk [vmem:[%s1534_s30 + $0xa0] sm:$0xff] %vm235_vm0, %v811_v38 }
 0x35c   : > { %876 = vst.msk [vmem:[%s1534_s30 + $0xa8] sm:$0xff] %vm235_vm0, %v812_v3 }
 0x35d   : > { %877 = vst.msk [vmem:[%s1534_s30 + $0xb0] sm:$0xff] %vm235_vm0, %v813_v39 }
 0x35e   : > { %878 = vst.msk [vmem:[%s1534_s30 + $0xb8] sm:$0xff] %vm235_vm0, %v814_v18 }
 0x35f   : > { %879 = vst.msk [vmem:[%s1534_s30 + $0xc0] sm:$0xff] %vm235_vm0, %v815_v44 }
 0x360   : > { %880 = vst.msk [vmem:[%s1534_s30 + $0xc8] sm:$0xff] %vm235_vm0, %v816_v37 }
 0x361   : > { %881 = vst.msk [vmem:[%s1534_s30 + $0xd0] sm:$0xff] %vm235_vm0, %v817_v22 }
 0x362   : > { %882 = vst.msk [vmem:[%s1534_s30 + $0xd8] sm:$0xff] %vm235_vm0, %v818_v26 }
 0x363   : > { %883 = vst.msk [vmem:[%s1534_s30 + $0xe0] sm:$0xff] %vm235_vm0, %v819_v62 }
 0x364   : > { %884 = vst.msk [vmem:[%s1534_s30 + $0xe8] sm:$0xff] %vm235_vm0, %v820_v9 }
 0x365   : > { %885 = vst.msk [vmem:[%s1534_s30 + $0xf0] sm:$0xff] %vm235_vm0, %v821_v0 }
 0x366   : > { %886 = vst.msk [vmem:[%s1534_s30 + $0xf8] sm:$0xff] %vm235_vm0, %v822_v53 }
 0x367 PF: > { %s13_s12 = sadd.s32 1, %s1026_s12  }
 0x368   : > { %p10_p4 = scmp.ge.s32.totalorder %s13_s12, 4  }
 0x36a   :  { %12 = sbr.rel (!%p10_p4) target bundleno = 1 (0x1), region = 62 }

</bundles_post_ra>
